<compile_context>
chip_gen: v7x
topology: tpu7x:2x2x1
jax: 0.10.0
libtpu: 0.0.40
codegen_flags: <defaults>
</compile_context>

<pallas_src>
import jax
import jax.numpy as jnp
from jax.experimental import pallas as pl
from jax.experimental.pallas import tpu as pltpu

LANE = 128


def _round_up(n: int, m: int) -> int:
    return ((n + m - 1) // m) * m


# ---------------------------------------------------------------------------
# Fused kernel factory
# ---------------------------------------------------------------------------
def make_mlp_kernel(num_hidden: int, has_output: bool):
    """Ref order: x, (w_i, b_i) * num_hidden, [w_out, b_out], out.

    w_i are bf16 with BatchNorm folded in; b_i are f32. Eval-mode Dropout == identity.
    The Dout==1 head is emitted with batch on the lane axis (lane-dense store).
    """
    # TODO(synk): train-mode semantics (batch-stat BatchNorm + stochastic Dropout via
    # pltpu.prng_*) intentionally not implemented; eval/inference semantics only.

    def kernel(*refs):
        x_ref = refs[0]
        o_ref = refs[-1]
        idx = 1

        h = x_ref[...]                                    # (TB, D0) f32
        for _ in range(num_hidden):
            w_ref, b_ref = refs[idx], refs[idx + 1]
            idx += 2
            # bf16 x bf16 -> f32 on the MXU; bias-add + ReLU in f32 on the VPU.
            y = jnp.dot(h.astype(jnp.bfloat16), w_ref[...],
                        preferred_element_type=jnp.float32)
            h = jnp.maximum(y + b_ref[...], 0.0)

        if has_output:
            w_ref, b_ref = refs[idx], refs[idx + 1]       # w: (1, D) bf16, b: (1, 1) f32
            # (1, D) . (TB, D) contracted over the last dims -> (1, TB): lane-dense
            # head result with batch on lanes (same contraction pattern as q @ k^T),
            # so the output store is an unmasked full-lane vst.
            r = jax.lax.dot_general(
                w_ref[...], h.astype(jnp.bfloat16),
                dimension_numbers=(((1,), (1,)), ((), ())),
                preferred_element_type=jnp.float32)
            o_ref[...] = r + b_ref[...]
        else:
            o_ref[...] = h

    return kernel


# ---------------------------------------------------------------------------
# pallas_call wrapper — batch-tiled grid, resident weights, lane-dense output
# ---------------------------------------------------------------------------
def mlp_forward_pallas(x, hidden_params, out_params, *, batch_tile=512):
    """hidden_params: tuple of (w_bf16 (d_in, h), b_f32 (1, h)) with BN folded in.
    out_params: (w_bf16 (1, d_last), b_f32 (1, 1)) for the Linear(., 1) head, or None."""
    B, d_in = x.shape
    has_output = out_params is not None
    num_hidden = len(hidden_params)

    # Tile geometry: batch tile multiple of 128 (lane-dense head store, MXU-friendly M);
    # feature dims padded to multiples of 128 lanes. Zero padding is exactly neutral
    # through Linear / ReLU / the head reduction.
    tb = _round_up(min(batch_tile, _round_up(B, LANE)), LANE)
    b_pad = _round_up(B, tb)
    grid = (b_pad // tb,)

    dims = [d_in] + [w.shape[1] for w, _ in hidden_params]
    dims_pad = [_round_up(max(d, 1), LANE) for d in dims]

    x_p = jnp.pad(x, ((0, b_pad - B), (0, dims_pad[0] - d_in)))

    inputs = [x_p]
    in_specs = [pl.BlockSpec((tb, dims_pad[0]), lambda i: (i, 0))]

    weight_bytes = 0
    for li, (w, b) in enumerate(hidden_params):
        di, do = w.shape
        w_p = jnp.pad(w, ((0, dims_pad[li] - di), (0, dims_pad[li + 1] - do)))
        b_p = jnp.pad(b, ((0, 0), (0, dims_pad[li + 1] - do)))
        inputs += [w_p, b_p]
        # Constant index_map -> blocks never change -> weights stay VMEM-resident.
        in_specs += [pl.BlockSpec(w_p.shape, lambda i: (0, 0)),
                     pl.BlockSpec(b_p.shape, lambda i: (0, 0))]
        weight_bytes += w_p.size * w_p.dtype.itemsize + b_p.size * 4

    if has_output:
        w_o, b_o = out_params
        w_op = jnp.pad(w_o, ((0, 0), (0, dims_pad[-1] - w_o.shape[1])))
        inputs += [w_op, b_o]
        in_specs += [pl.BlockSpec(w_op.shape, lambda i: (0, 0)),
                     pl.BlockSpec(b_o.shape, lambda i: (0, 0))]
        weight_bytes += w_op.size * w_op.dtype.itemsize + b_o.size * 4
        # Lane-dense output: batch sits on the lane axis, one (1, TB) block per step.
        out_shape = jax.ShapeDtypeStruct((1, b_pad), jnp.float32)
        out_specs = pl.BlockSpec((1, tb), lambda i: (0, i))
        out_elems = b_pad
        out_tile_bytes = tb * 4
    else:
        out_shape = jax.ShapeDtypeStruct((b_pad, dims_pad[-1]), jnp.float32)
        out_specs = pl.BlockSpec((tb, dims_pad[-1]), lambda i: (i, 0))
        out_elems = b_pad * dims_pad[-1]
        out_tile_bytes = tb * dims_pad[-1] * 4

    # VMEM budget: resident weights + double-buffered x/out tiles + live activations.
    # (On v7x's 64 MiB this demo footprint is tiny; for huge per-layer weights switch
    # the w_i specs to pipeline_mode=pl.Buffered(2) and stage layer-by-layer.)
    x_tile_bytes = tb * dims_pad[0] * 4
    act_bytes = 3 * tb * max(dims_pad) * 4
    vmem_need = weight_bytes + 2 * (x_tile_bytes + out_tile_bytes) + act_bytes
    vmem_limit = int(min(max(32 * 1024 * 1024, 2 * vmem_need), 96 * 1024 * 1024))

    # Advisory cost so XLA schedules the custom call sensibly.
    flops = 0
    for di, do in zip(dims_pad[:-1], dims_pad[1:]):
        flops += 2 * b_pad * di * do
    if has_output:
        flops += 2 * b_pad * dims_pad[-1]
    bytes_accessed = x_p.size * 4 + weight_bytes + out_elems * 4
    cost = pl.CostEstimate(flops=flops, transcendentals=0,
                           bytes_accessed=bytes_accessed)

    out = pl.pallas_call(
        make_mlp_kernel(num_hidden, has_output),
        out_shape=out_shape,
        grid=grid,
        in_specs=in_specs,
        out_specs=out_specs,
        compiler_params=pltpu.CompilerParams(
            dimension_semantics=("parallel",),
            vmem_limit_bytes=vmem_limit),
        cost_estimate=cost,
    )(*inputs)

    if has_output:
        return out.reshape(b_pad, 1)[:B]
    return out[:B, :dims[-1]]


mlp_forward = jax.jit(mlp_forward_pallas, static_argnames=("batch_tile",))


# ---------------------------------------------------------------------------
# Parameter construction (mirrors the PyTorch module; BN folded, weights in bf16)
# ---------------------------------------------------------------------------
def init_mlp_params(key, input_dim, mlp_dims, output_layer=True):
    """Per hidden layer: Linear(in, h) weight (stored transposed as (in, h)) + bias,
    with eval-mode BatchNorm1d(h) folded in:
        scale = gamma / sqrt(running_var + eps)
        W' = W * scale,   b' = b * scale + (beta - running_mean * scale)
    Weights are stored bf16 (MXU operand dtype); biases stay f32."""
    hidden_params = []
    d_in = input_dim
    eps = 1e-5
    for h in mlp_dims:
        key, kw, kb, kg, kbe, km, kv = jax.random.split(key, 7)
        bound = 1.0 / float(d_in) ** 0.5
        w = jax.random.uniform(kw, (d_in, h), jnp.float32, -bound, bound)
        b = jax.random.uniform(kb, (1, h), jnp.float32, -bound, bound)
        gamma = 1.0 + 0.1 * jax.random.normal(kg, (1, h), jnp.float32)
        beta = 0.1 * jax.random.normal(kbe, (1, h), jnp.float32)
        running_mean = 0.1 * jax.random.normal(km, (1, h), jnp.float32)
        running_var = 1.0 + 0.1 * jax.random.uniform(kv, (1, h), jnp.float32)

        scale = gamma / jnp.sqrt(running_var + eps)
        shift = beta - running_mean * scale
        w_folded = (w * scale).astype(jnp.bfloat16)   # (d_in, h)
        b_folded = b * scale + shift                  # (1, h) f32
        hidden_params.append((w_folded, b_folded))
        d_in = h

    out_params = None
    if output_layer:
        key, kw, kb = jax.random.split(key, 3)
        bound = 1.0 / float(d_in) ** 0.5
        w = jax.random.uniform(kw, (1, d_in), jnp.float32, -bound, bound).astype(jnp.bfloat16)
        b = jax.random.uniform(kb, (1, 1), jnp.float32, -bound, bound)
        out_params = (w, b)

    return tuple(hidden_params), out_params


# ---------------------------------------------------------------------------
# Pure-JAX reference (same bf16 cast points as the kernel) for a sanity check
# ---------------------------------------------------------------------------
def mlp_reference(x, hidden_params, out_params):
    h = x
    for w, b in hidden_params:
        h16 = h.astype(jnp.bfloat16).astype(jnp.float32)
        h = jnp.maximum(jnp.dot(h16, w.astype(jnp.float32)) + b, 0.0)
    if out_params is not None:
        w, b = out_params
        h16 = h.astype(jnp.bfloat16).astype(jnp.float32)
        h = jnp.sum(h16 * w.astype(jnp.float32), axis=-1, keepdims=True) + b
    return h


# ---------------------------------------------------------------------------
if __name__ == "__main__":
    key = jax.random.PRNGKey(0)
    k_x, k_p = jax.random.split(key)

    batch, input_dim = 200, 32
    mlp_dims = (32, 16)

    x = jax.random.normal(k_x, (batch, input_dim), jnp.float32)
    hidden_params, out_params = init_mlp_params(
        k_p, input_dim, mlp_dims, output_layer=True
    )

    # batch_tile=128 -> b_pad=256, grid=(2,): exercises the pipelined multi-step grid.
    out = mlp_forward(x, hidden_params, out_params, batch_tile=128)
    jax.block_until_ready(out)

    ref = mlp_reference(x, hidden_params, out_params)
    assert out.shape == (batch, 1), out.shape
    assert out.dtype == jnp.float32, out.dtype
    max_err = float(jnp.max(jnp.abs(out - ref)))
    assert jnp.allclose(out, ref, atol=1e-2, rtol=1e-2), max_err
    print("KERNEL_OK")
</pallas_src>

<mosaic_0001>
module attributes {stable_mosaic.version = 11 : i64} {
  func.func @kernel(%arg0: i32, %arg1: memref<128x128xf32, #tpu.memory_space<vmem>>, %arg2: memref<128x128xbf16, #tpu.memory_space<vmem>>, %arg3: memref<1x128xf32, #tpu.memory_space<vmem>>, %arg4: memref<128x128xbf16, #tpu.memory_space<vmem>>, %arg5: memref<1x128xf32, #tpu.memory_space<vmem>>, %arg6: memref<1x128xbf16, #tpu.memory_space<vmem>>, %arg7: memref<1x1xf32, #tpu.memory_space<vmem>>, %arg8: memref<1x128xf32, #tpu.memory_space<vmem>>) attributes {dimension_semantics = [#tpu.dimension_semantics<parallel>], iteration_bounds = array<i64: 2>, scalar_prefetch = 0 : i64, scratch_operands = 0 : i64, tpu.core_type = #tpu.core_type<tc>, window_params = [{transform_indices = @transform_0, window_bounds = array<i64: 128, 128>}, {pipeline_mode = #tpu.pipeline_mode<synchronous>, transform_indices = @transform_1, window_bounds = array<i64: 128, 128>}, {pipeline_mode = #tpu.pipeline_mode<synchronous>, transform_indices = @transform_2, window_bounds = array<i64: 1, 128>}, {pipeline_mode = #tpu.pipeline_mode<synchronous>, transform_indices = @transform_3, window_bounds = array<i64: 128, 128>}, {pipeline_mode = #tpu.pipeline_mode<synchronous>, transform_indices = @transform_4, window_bounds = array<i64: 1, 128>}, {pipeline_mode = #tpu.pipeline_mode<synchronous>, transform_indices = @transform_5, window_bounds = array<i64: 1, 128>}, {pipeline_mode = #tpu.pipeline_mode<synchronous>, transform_indices = @transform_6, window_bounds = array<i64: 1, 1>}, {transform_indices = @transform_7, window_bounds = array<i64: 1, 128>}]} {
    %c0 = arith.constant 0 : index
    %c0_0 = arith.constant 0 : index
    %0 = vector.load %arg1[%c0, %c0_0] : memref<128x128xf32, #tpu.memory_space<vmem>>, vector<128x128xf32>
    %1 = arith.truncf %0 : vector<128x128xf32> to vector<128x128xbf16>
    %c0_1 = arith.constant 0 : index
    %c0_2 = arith.constant 0 : index
    %2 = vector.load %arg2[%c0_1, %c0_2] : memref<128x128xbf16, #tpu.memory_space<vmem>>, vector<128x128xbf16>
    %cst = arith.constant dense<0.000000e+00> : vector<128x128xf32>
    %3 = tpu.matmul %1, %2, %cst {dimension_numbers = #tpu.dot_dimension_numbers<[1], [0], [0], [1], [0, 0, 1, 1], [], []>} : vector<128x128xbf16>, vector<128x128xbf16>, vector<128x128xf32> -> vector<128x128xf32>
    %c0_3 = arith.constant 0 : index
    %c0_4 = arith.constant 0 : index
    %4 = vector.load %arg3[%c0_3, %c0_4] : memref<1x128xf32, #tpu.memory_space<vmem>>, vector<1x128xf32>
    %5 = vector.broadcast %4 : vector<1x128xf32> to vector<128x128xf32>
    %6 = arith.addf %3, %5 : vector<128x128xf32>
    %cst_5 = arith.constant 0.000000e+00 : f32
    %7 = vector.broadcast %cst_5 : f32 to vector<128x128xf32>
    %8 = arith.maximumf %6, %7 : vector<128x128xf32>
    %9 = arith.truncf %8 : vector<128x128xf32> to vector<128x128xbf16>
    %c0_6 = arith.constant 0 : index
    %c0_7 = arith.constant 0 : index
    %10 = vector.load %arg4[%c0_6, %c0_7] : memref<128x128xbf16, #tpu.memory_space<vmem>>, vector<128x128xbf16>
    %cst_8 = arith.constant dense<0.000000e+00> : vector<128x128xf32>
    %11 = tpu.matmul %9, %10, %cst_8 {dimension_numbers = #tpu.dot_dimension_numbers<[1], [0], [0], [1], [0, 0, 1, 1], [], []>} : vector<128x128xbf16>, vector<128x128xbf16>, vector<128x128xf32> -> vector<128x128xf32>
    %c0_9 = arith.constant 0 : index
    %c0_10 = arith.constant 0 : index
    %12 = vector.load %arg5[%c0_9, %c0_10] : memref<1x128xf32, #tpu.memory_space<vmem>>, vector<1x128xf32>
    %13 = vector.broadcast %12 : vector<1x128xf32> to vector<128x128xf32>
    %14 = arith.addf %11, %13 : vector<128x128xf32>
    %cst_11 = arith.constant 0.000000e+00 : f32
    %15 = vector.broadcast %cst_11 : f32 to vector<128x128xf32>
    %16 = arith.maximumf %14, %15 : vector<128x128xf32>
    %c0_12 = arith.constant 0 : index
    %c0_13 = arith.constant 0 : index
    %17 = vector.load %arg6[%c0_12, %c0_13] : memref<1x128xbf16, #tpu.memory_space<vmem>>, vector<1x128xbf16>
    %18 = arith.truncf %16 : vector<128x128xf32> to vector<128x128xbf16>
    %cst_14 = arith.constant dense<0.000000e+00> : vector<1x128xf32>
    %19 = tpu.matmul %17, %18, %cst_14 {dimension_numbers = #tpu.dot_dimension_numbers<[1], [1], [0], [0], [0, 0, 1, 0], [], []>} : vector<1x128xbf16>, vector<128x128xbf16>, vector<1x128xf32> -> vector<1x128xf32>
    %c0_15 = arith.constant 0 : index
    %c0_16 = arith.constant 0 : index
    %20 = vector.load %arg7[%c0_15, %c0_16] : memref<1x1xf32, #tpu.memory_space<vmem>>, vector<1x1xf32>
    %21 = vector.broadcast %20 : vector<1x1xf32> to vector<1x128xf32>
    %22 = arith.addf %19, %21 : vector<1x128xf32>
    %c0_17 = arith.constant 0 : index
    %c0_18 = arith.constant 0 : index
    %23 = vector.load %arg8[%c0_17, %c0_18] : memref<1x128xf32, #tpu.memory_space<vmem>>, vector<1x128xf32>
    tpu.vector_store %arg8[%c0_17, %c0_18], %22 {strides = array<i32>} : memref<1x128xf32, #tpu.memory_space<vmem>>, vector<1x128xf32>,
    return
  }
  func.func @transform_0(%arg0: i32) -> (i32, i32) {
    %c0_i32 = arith.constant 0 : i32
    %c0_i32_0 = arith.constant 0 : i32
    return %arg0, %c0_i32 : i32, i32
  }
  func.func @transform_1(%arg0: i32) -> (i32, i32) {
    %c0_i32 = arith.constant 0 : i32
    %c0_i32_0 = arith.constant 0 : i32
    %c0_i32_1 = arith.constant 0 : i32
    return %c0_i32, %c0_i32_0 : i32, i32
  }
  func.func @transform_2(%arg0: i32) -> (i32, i32) {
    %c0_i32 = arith.constant 0 : i32
    %c0_i32_0 = arith.constant 0 : i32
    %c0_i32_1 = arith.constant 0 : i32
    return %c0_i32, %c0_i32_0 : i32, i32
  }
  func.func @transform_3(%arg0: i32) -> (i32, i32) {
    %c0_i32 = arith.constant 0 : i32
    %c0_i32_0 = arith.constant 0 : i32
    %c0_i32_1 = arith.constant 0 : i32
    return %c0_i32, %c0_i32_0 : i32, i32
  }
  func.func @transform_4(%arg0: i32) -> (i32, i32) {
    %c0_i32 = arith.constant 0 : i32
    %c0_i32_0 = arith.constant 0 : i32
    %c0_i32_1 = arith.constant 0 : i32
    return %c0_i32, %c0_i32_0 : i32, i32
  }
  func.func @transform_5(%arg0: i32) -> (i32, i32) {
    %c0_i32 = arith.constant 0 : i32
    %c0_i32_0 = arith.constant 0 : i32
    %c0_i32_1 = arith.constant 0 : i32
    return %c0_i32, %c0_i32_0 : i32, i32
  }
  func.func @transform_6(%arg0: i32) -> (i32, i32) {
    %c0_i32 = arith.constant 0 : i32
    %c0_i32_0 = arith.constant 0 : i32
    %c0_i32_1 = arith.constant 0 : i32
    return %c0_i32, %c0_i32_0 : i32, i32
  }
  func.func @transform_7(%arg0: i32) -> (i32, i32) {
    %c0_i32 = arith.constant 0 : i32
    %c0_i32_0 = arith.constant 0 : i32
    return %c0_i32, %arg0 : i32, i32
  }
}

</mosaic_0001>

<bundles_post_ra>
// kernel: mlp_forward_pallas.1
= control target key start
LH: loop header
LB: loop body
LE: loop exit
PB: predicated region body
PF: predicated region fallthrough
CT: control target
= control target key end

     0   :  { %s1021_s26 = smov 0   ;;  %s1127_s0 = inlined_call_operand.vmem [shape: f32[256,128], index: 0, kind: input, shape index: {}]   ;;  %s1128_s1 = inlined_call_operand.vmem [shape: bf16[128,128], index: 1, kind: input, shape index: {}]   ;;  %s1129_s2 = inlined_call_operand.vmem [shape: f32[1,128], index: 2, kind: input, shape index: {}]   ;;  %s1130_s3 = inlined_call_operand.vmem [shape: bf16[128,128], index: 3, kind: input, shape index: {}]   ;;  %s1131_s4 = inlined_call_operand.vmem [shape: f32[1,128], index: 4, kind: input, shape index: {}]   ;;  %s1132_s5 = inlined_call_operand.vmem [shape: bf16[1,128], index: 5, kind: input, shape index: {}]   ;;  %s1133_s6 = inlined_call_operand.<no memory space> [shape: f32[1,1], index: 6, kind: input, shape index: {}]   ;;  %s1134_s7 = inlined_call_operand.vmem [shape: f32[1,256], index: 7, kind: output, shape index: {}]  }
   0x1   :  { %v12_v0 = vstv %s1133_s6 }
   0x2   :  { %13 = vst [vmem:[#allocation2] sm:$0x1] %v12_v0 }
   0x3 LB: > { %s1027_s27 = sadd.s32 4294967295, %s973_s26   ;;  %p791_p0 = scmp.ge.s32.totalorder %s973_s26, 1  ;;  %s973_s26 = sphi %s1021_s26, %s19_s26  }
   0x4   : > { %p240_p1 = scmp.lt.s32.totalorder %s973_s26, 3 }
   0x6   : > { %p241_p2 = pnand %p791_p0, %p240_p1 }
   0x7   : > { %v951_v1 = vld [vmem:[%s1128_s1] sm:$0xff] (!%p241_p2)   ;;  %s792_s6 = sshll.u32 (!%p241_p2), %s1027_s27, 4  ;;  %v952_v2 = vld [vmem:[%s1128_s1 + $0x8] sm:$0xff] (!%p241_p2)   ;;  %v953_v3 = vld [vmem:[%s1128_s1 + $0x10] sm:$0xff] (!%p241_p2)   ;;  %vm976_vm0 = vmmov (!%p241_p2), 0   ;;  %p276_p4 = scmp.lt.s32.totalorder (!%p241_p2), %s1027_s27, 1 }
   0x8   : > { %244 = sbr.rel (%p241_p2) target bundleno = 761 (0x2f9), region = 48  ;;  %p271_p3 = scmp.lt.s32.totalorder (!%p241_p2), %s792_s6, 31  ;;  %855 = vmatprep.subr.bf16.mxu1 (!%p241_p2), %v951_v1  ;;  %v954_v4 = vld [vmem:[%s1128_s1 + $0x18] sm:$0xff] (!%p241_p2)   ;;  %v955_v8 = vld [vmem:[%s1128_s1 + $0x20] sm:$0xff] (!%p241_p2)   ;;  %v956_v9 = vld [vmem:[%s1128_s1 + $0x28] sm:$0xff] (!%p241_p2)  }
   0x9   : > { %856 = vmatpush3.bf16.msra.mxu1 (!%p241_p2), %v951_v1  ;;  %v957_v10 = vld [vmem:[%s1128_s1 + $0x30] sm:$0xff] (!%p241_p2)   ;;  %v958_v11 = vld [vmem:[%s1128_s1 + $0x38] sm:$0xff] (!%p241_p2)   ;;  %v959_v16 = vld [vmem:[%s1130_s3] sm:$0xff] (!%p241_p2)  }
   0xa   : > { %857 = vmatprep.subr.bf16.mxu1 (!%p241_p2), %v952_v2  ;;  %v960_v19 = vld [vmem:[%s1130_s3 + $0x8] sm:$0xff] (!%p241_p2)   ;;  %v961_v24 = vld [vmem:[%s1130_s3 + $0x10] sm:$0xff] (!%p241_p2)   ;;  %v962_v27 = vld [vmem:[%s1130_s3 + $0x18] sm:$0xff] (!%p241_p2)  }
   0xb   : > { %v963_v32 = vld [vmem:[%s1130_s3 + $0x20] sm:$0xff] (!%p241_p2)   ;;  %v964_v35 = vld [vmem:[%s1130_s3 + $0x28] sm:$0xff] (!%p241_p2)   ;;  %v965_v39 = vld [vmem:[%s1130_s3 + $0x30] sm:$0xff] (!%p241_p2)  }
   0xc   : > { %v966_v40 = vld [vmem:[%s1130_s3 + $0x38] sm:$0xff] (!%p241_p2)   ;;  %v794_v41 = vld [vmem:[%s1129_s2] ss:$0 sm:$0xff] (!%p241_p2) }
   0xd   : > { %858 = vmatpush3.bf16.msra.mxu1 (!%p241_p2), %v952_v2 }
   0xe   : > { %859 = vmatprep.subr.bf16.mxu1 (!%p241_p2), %v953_v3 }
   0xf   : > { %s1136_s6 = smov (!%p271_p3, %s792_s6), 31  ;;  %s1138_s27 = smov (!%p276_p4, %s1027_s27), 1 }
  0x10   : > { %s793_s11 = sshll.u32 %s1136_s6, 3  ;;  %s278_s29 = scalar_lea.vmem %s1134_s7, %s1138_s27 }
  0x11   : > { %s1044_s14 = scalar_lea.vmem %s1127_s0, %s793_s11  ;;  %860 = vmatpush3.bf16.msra.mxu1 %v953_v3 }
  0x12   : > { %v280_v5 = vld [vmem:[%s1044_s14] sm:$0xff]  ;;  %v281_v6 = vld [vmem:[%s1044_s14 + $0x8] sm:$0xff]  ;;  %861 = vmatprep.subr.bf16.mxu1 %v954_v4  ;;  %v282_v12 = vld [vmem:[%s1044_s14 + $0x10] sm:$0xff] }
  0x13   : > { %v296_v7 = vpack.c.bf16 %v281_v6, %v280_v5  ;;  %v283_v13 = vld [vmem:[%s1044_s14 + $0x18] sm:$0xff]  ;;  %v284_v14 = vld [vmem:[%s1044_s14 + $0x20] sm:$0xff]  ;;  %v285_v15 = vld [vmem:[%s1044_s14 + $0x28] sm:$0xff] }
  0x14   : > { %v297_v17 = vpack.c.bf16 %v283_v13, %v282_v12  ;;  %v298_v18 = vpack.c.bf16 %v285_v15, %v284_v14  ;;  %v286_v20 = vld [vmem:[%s1044_s14 + $0x30] sm:$0xff]  ;;  %v287_v21 = vld [vmem:[%s1044_s14 + $0x38] sm:$0xff]  ;;  %v288_v22 = vld [vmem:[%s1044_s14 + $0x40] sm:$0xff] }
  0x15   : > { %871 = vmatprep.mubr.bf16.mxu1 %v296_v7  ;;  %862 = vmatpush3.bf16.msra.mxu1 %v954_v4  ;;  %v289_v23 = vld [vmem:[%s1044_s14 + $0x48] sm:$0xff]  ;;  %v299_v25 = vpack.c.bf16 %v287_v21, %v286_v20  ;;  %v290_v28 = vld [vmem:[%s1044_s14 + $0x50] sm:$0xff]  ;;  %v291_v29 = vld [vmem:[%s1044_s14 + $0x58] sm:$0xff] }
  0x16   : > { %863 = vmatprep.subr.bf16.mxu1 %v955_v8  ;;  %v300_v26 = vpack.c.bf16 %v289_v23, %v288_v22  ;;  %v292_v30 = vld [vmem:[%s1044_s14 + $0x60] sm:$0xff]  ;;  %v293_v31 = vld [vmem:[%s1044_s14 + $0x68] sm:$0xff]  ;;  %v301_v33 = vpack.c.bf16 %v291_v29, %v290_v28  ;;  %v294_v36 = vld [vmem:[%s1044_s14 + $0x70] sm:$0xff] }
  0x17   : > { %v302_v34 = vpack.c.bf16 %v293_v31, %v292_v30  ;;  %v295_v37 = vld [vmem:[%s1044_s14 + $0x78] sm:$0xff] }
  0x18   : > { %v303_v38 = vpack.c.bf16 %v295_v37, %v294_v36  ;;  %v977_v36 = vmov 0   ;;  %v803_v37 = vld [vmem:[%s1131_s4] ss:$0 sm:$0xff] }
  0x19   : > { %864 = vmatpush3.bf16.msra.mxu1 %v955_v8  ;;  %950 = vset.pattern.permute.xlu0 %v977_v36 }
  0x1a   : > { %865 = vmatprep.subr.bf16.mxu1 %v956_v9 }
  0x1d   : > { %866 = vmatpush3.bf16.msra.mxu1 %v956_v9 }
  0x1e   : > { %867 = vmatprep.subr.bf16.mxu1 %v957_v10 }
  0x21   : > { %868 = vmatpush3.bf16.msra.mxu1 %v957_v10 }
  0x22   : > { %869 = vmatprep.subr.bf16.mxu1 %v958_v11 }
  0x25   : > { %870 = vmatpush3.bf16.msra.mxu1 %v958_v11 }
  0x26   : > { %887 = vmatprep.subr.bf16.mxu1 %v959_v16 }
  0x28   : > { %872 = vmatmul.mubr.bf16.vlgmr.msra.gmra.mrb[0].mxu1 %v297_v17 }
  0x29   : > { %875 = vmatprep.mubr.bf16.mxu1 %v298_v18  ;;  %888 = vmatpush3.bf16.msra.mxu1 %v959_v16 }
  0x2a   : > { %889 = vmatprep.subr.bf16.mxu1 %v960_v19 }
  0x2d   : > { %890 = vmatpush3.bf16.msra.mxu1 %v960_v19 }
  0x2e   : > { %891 = vmatprep.subr.bf16.mxu1 %v961_v24 }
  0x30   : > { %876 = vmatmul.mubr.bf16.gmra.mrb[4].mxu1 %v299_v25 }
  0x31   : > { %879 = vmatprep.mubr.bf16.mxu1 %v300_v26  ;;  %892 = vmatpush3.bf16.msra.mxu1 %v961_v24 }
  0x32   : > { %893 = vmatprep.subr.bf16.mxu1 %v962_v27 }
  0x35   : > { %894 = vmatpush3.bf16.msra.mxu1 %v962_v27 }
  0x36   : > { %895 = vmatprep.subr.bf16.mxu1 %v963_v32 }
  0x38   : > { %880 = vmatmul.mubr.bf16.gmra.mrb[8].mxu1 %v301_v33 }
  0x39   : > { %883 = vmatprep.mubr.bf16.mxu1 %v302_v34  ;;  %896 = vmatpush3.bf16.msra.mxu1 %v963_v32  ;;  %v975_v34 = vmov 0.0  }
  0x3a   : > { %897 = vmatprep.subr.bf16.mxu1 %v964_v35  ;;  %919 = vmatprep.subr.bf16.mxu0 %v975_v34 }
  0x3b   : > { %935 = vmatprep.mubr.msk.bf16.mxu0 %vm976_vm0, %v975_v34 }
  0x3d   : > { %898 = vmatpush3.bf16.msra.mxu1 %v964_v35  ;;  %v689_v35 = vld [vmem:[#allocation2] sm:$0x1] }
  0x3e   : > { %899 = vmatprep.subr.bf16.mxu1 %v965_v39  ;;  %692 = vperm.xlu0 %950, %v689_v35  }
  0x40   : > { %884 = vmatmul.mubr.bf16.gmra.mrb[12].mxu1 %v303_v38 }
  0x41   : > { %900 = vmatpush3.bf16.msra.mxu1 %v965_v39 }
  0x42   : > { %901 = vmatprep.subr.bf16.mxu1 %v966_v40 }
  0x45   : > { %902 = vmatpush3.bf16.msra.mxu1 %v966_v40 }
  0xbd   : > { %v693_v35 = vpop.permute.xlu0 %692 }
  0xfb   : > { %v873_v42 = vpop.f32.mrb[0].mxu1 }
  0xfc   : > { %v418_v43 = vadd.f32 %v873_v42, %v794_v41  ;;  %v409_v44 = vpop.f32.mrb[1].mxu1 }
  0xfd   : > { %v410_v45 = vadd.f32 %v794_v41, %v409_v44  ;;  %v874_v46 = vpop.f32.mrb[2].mxu1 }
  0xfe   : > { %v421_v47 = vadd.f32 %v874_v46, %v794_v41  ;;  %v412_v48 = vpop.f32.mrb[3].mxu1  ;;  %v474_v50 = vmax.f32 %v418_v43, 0.0 }
  0xff   : > { %v413_v49 = vadd.f32 %v794_v41, %v412_v48  ;;  %v472_v52 = vmax.f32 %v410_v45, 0.0 }
 0x100   : > { %v475_v51 = vmax.f32 %v421_v47, 0.0 }
 0x101   : > { %v473_v53 = vmax.f32 %v413_v49, 0.0 }
 0x102   : > { %v489_v54 = vpack.c.bf16 %v475_v51, %v474_v50 }
 0x103   : > { %v488_v55 = vpack.c.bf16 %v473_v53, %v472_v52  ;;  %v877_v56 = vpop.f32.mrb[4].mxu1 }
 0x104   : > { %v434_v57 = vadd.f32 %v877_v56, %v794_v41  ;;  %v425_v58 = vpop.f32.mrb[5].mxu1 }
 0x105   : > { %v426_v59 = vadd.f32 %v794_v41, %v425_v58  ;;  %903 = vmatprep.mubr.bf16.mxu1 %v488_v55  ;;  %v878_v60 = vpop.f32.mrb[6].mxu1 }
 0x106   : > { %v478_v61 = vmax.f32 %v434_v57, 0.0  ;;  %v437_v62 = vadd.f32 %v878_v60, %v794_v41  ;;  %904 = vmatmul.mubr.bf16.vlgmr.msra.gmra.mrb[16].mxu1 %v489_v54  ;;  %v428_v63 = vpop.f32.mrb[7].mxu1 }
 0x107   : > { %v476_v0 = vmax.f32 %v426_v59, 0.0  ;;  %v429_v1 = vadd.f32 %v794_v41, %v428_v63 }
 0x108   : > { %v479_v2 = vmax.f32 %v437_v62, 0.0 }
 0x109   : > { %v477_v3 = vmax.f32 %v429_v1, 0.0 }
 0x10a   : > { %v491_v4 = vpack.c.bf16 %v479_v2, %v478_v61 }
 0x10b   : > { %v490_v5 = vpack.c.bf16 %v477_v3, %v476_v0  ;;  %v881_v6 = vpop.f32.mrb[8].mxu1 }
 0x10c   : > { %v450_v7 = vadd.f32 %v881_v6, %v794_v41  ;;  %v441_v8 = vpop.f32.mrb[9].mxu1 }
 0x10d   : > { %907 = vmatprep.mubr.bf16.mxu1 %v490_v5  ;;  %v442_v9 = vadd.f32 %v794_v41, %v441_v8  ;;  %v882_v10 = vpop.f32.mrb[10].mxu1 }
 0x10e   : > { %908 = vmatmul.mubr.bf16.gmra.mrb[20].mxu1 %v491_v4  ;;  %v482_v11 = vmax.f32 %v450_v7, 0.0  ;;  %v453_v12 = vadd.f32 %v882_v10, %v794_v41  ;;  %v444_v13 = vpop.f32.mrb[11].mxu1 }
 0x10f   : > { %v480_v14 = vmax.f32 %v442_v9, 0.0  ;;  %v445_v15 = vadd.f32 %v794_v41, %v444_v13 }
 0x110   : > { %v483_v16 = vmax.f32 %v453_v12, 0.0 }
 0x111   : > { %v481_v17 = vmax.f32 %v445_v15, 0.0 }
 0x112   : > { %v493_v18 = vpack.c.bf16 %v483_v16, %v482_v11 }
 0x113   : > { %v492_v19 = vpack.c.bf16 %v481_v17, %v480_v14  ;;  %v885_v20 = vpop.f32.mrb[12].mxu1 }
 0x114   : > { %v466_v21 = vadd.f32 %v885_v20, %v794_v41  ;;  %v457_v22 = vpop.f32.mrb[13].mxu1 }
 0x115   : > { %911 = vmatprep.mubr.bf16.mxu1 %v492_v19  ;;  %v458_v23 = vadd.f32 %v794_v41, %v457_v22  ;;  %v886_v24 = vpop.f32.mrb[14].mxu1 }
 0x116   : > { %912 = vmatmul.mubr.bf16.gmra.mrb[24].mxu1 %v493_v18  ;;  %v486_v25 = vmax.f32 %v466_v21, 0.0  ;;  %v469_v26 = vadd.f32 %v886_v24, %v794_v41  ;;  %v460_v27 = vpop.f32.mrb[15].mxu1 }
 0x117   : > { %v484_v28 = vmax.f32 %v458_v23, 0.0  ;;  %v461_v29 = vadd.f32 %v794_v41, %v460_v27 }
 0x118   : > { %v487_v30 = vmax.f32 %v469_v26, 0.0 }
 0x119   : > { %v485_v31 = vmax.f32 %v461_v29, 0.0 }
 0x11a   : > { %v495_v32 = vpack.c.bf16 %v487_v30, %v486_v25  ;;  %v680_v30 = vld [vmem:[%s1132_s5] sm:$0x1] }
 0x11b   : > { %v494_v33 = vpack.c.bf16 %v485_v31, %v484_v28  ;;  %v695_v31 = vlaneseq }
 0x11d   : > { %915 = vmatprep.mubr.bf16.mxu1 %v494_v33 }
 0x11e   : > { %916 = vmatmul.mubr.bf16.gmra.mrb[28].mxu1 %v495_v32  ;;  %v696_v32 = vshrl.u32 %v695_v31, 7 }
 0x120   : > { %v697_v33 = vsub.s32 0, %v696_v32 }
 0x122   : > { %v698_v36 = vrot.slane %v693_v35, %v697_v33 }
 0x1d9   : > { %v905_v38 = vpop.f32.mrb[16].mxu1 }
 0x1da   : > { %v610_v39 = vadd.f32 %v905_v38, %v803_v37  ;;  %v601_v40 = vpop.f32.mrb[17].mxu1 }
 0x1db   : > { %v602_v41 = vadd.f32 %v803_v37, %v601_v40  ;;  %v906_v42 = vpop.f32.mrb[18].mxu1 }
 0x1dc   : > { %v613_v43 = vadd.f32 %v906_v42, %v803_v37  ;;  %v604_v44 = vpop.f32.mrb[19].mxu1  ;;  %v666_v46 = vmax.f32 %v610_v39, 0.0 }
 0x1dd   : > { %v605_v45 = vadd.f32 %v803_v37, %v604_v44  ;;  %v664_v48 = vmax.f32 %v602_v41, 0.0 }
 0x1de   : > { %v667_v47 = vmax.f32 %v613_v43, 0.0 }
 0x1df   : > { %v665_v49 = vmax.f32 %v605_v45, 0.0 }
 0x1e0   : > { %v682_v50 = vpack.c.bf16 %v667_v47, %v666_v46 }
 0x1e1   : > { %v909_v51 = vpop.f32.mrb[20].mxu1  ;;  %v681_v52 = vpack.c.bf16 %v665_v49, %v664_v48 }
 0x1e2   : > { %v626_v53 = vadd.f32 %v909_v51, %v803_v37  ;;  %v617_v54 = vpop.f32.mrb[21].mxu1 }
 0x1e3   : > { %v618_v55 = vadd.f32 %v803_v37, %v617_v54  ;;  %920 = vmatpush3.bf16.xpose.msra.mxu0 %v681_v52  ;;  %v910_v56 = vpop.f32.mrb[22].mxu1 }
 0x1e4   : > { %v670_v57 = vmax.f32 %v626_v53, 0.0  ;;  %v629_v58 = vadd.f32 %v910_v56, %v803_v37  ;;  %v620_v59 = vpop.f32.mrb[23].mxu1  ;;  %921 = vmatprep.subr.bf16.mxu0 %v975_v34 }
 0x1e5   : > { %v668_v60 = vmax.f32 %v618_v55, 0.0  ;;  %v621_v61 = vadd.f32 %v803_v37, %v620_v59 }
 0x1e6   : > { %v671_v62 = vmax.f32 %v629_v58, 0.0 }
 0x1e7   : > { %v669_v63 = vmax.f32 %v621_v61, 0.0 }
 0x1e8   : > { %v684_v0 = vpack.c.bf16 %v671_v62, %v670_v57 }
 0x1e9   : > { %v683_v1 = vpack.c.bf16 %v669_v63, %v668_v60  ;;  %v913_v2 = vpop.f32.mrb[24].mxu1 }
 0x1ea   : > { %v642_v3 = vadd.f32 %v913_v2, %v803_v37  ;;  %v633_v4 = vpop.f32.mrb[25].mxu1 }
 0x1eb   : > { %922 = vmatpush3.bf16.xpose.msra.mxu0 %v682_v50  ;;  %v634_v5 = vadd.f32 %v803_v37, %v633_v4  ;;  %v914_v6 = vpop.f32.mrb[26].mxu1 }
 0x1ec   : > { %v674_v7 = vmax.f32 %v642_v3, 0.0  ;;  %923 = vmatprep.subr.bf16.mxu0 %v975_v34  ;;  %v645_v8 = vadd.f32 %v914_v6, %v803_v37  ;;  %v636_v9 = vpop.f32.mrb[27].mxu1 }
 0x1ed   : > { %v672_v10 = vmax.f32 %v634_v5, 0.0  ;;  %v637_v11 = vadd.f32 %v803_v37, %v636_v9 }
 0x1ee   : > { %v675_v12 = vmax.f32 %v645_v8, 0.0 }
 0x1ef   : > { %v673_v13 = vmax.f32 %v637_v11, 0.0 }
 0x1f0   : > { %v686_v14 = vpack.c.bf16 %v675_v12, %v674_v7 }
 0x1f1   : > { %v685_v15 = vpack.c.bf16 %v673_v13, %v672_v10  ;;  %v917_v16 = vpop.f32.mrb[28].mxu1 }
 0x1f2   : > { %v658_v17 = vadd.f32 %v917_v16, %v803_v37  ;;  %v649_v18 = vpop.f32.mrb[29].mxu1 }
 0x1f3   : > { %924 = vmatpush3.bf16.xpose.msra.mxu0 %v683_v1  ;;  %v650_v19 = vadd.f32 %v803_v37, %v649_v18  ;;  %v918_v20 = vpop.f32.mrb[30].mxu1 }
 0x1f4   : > { %925 = vmatprep.subr.bf16.mxu0 %v975_v34  ;;  %v678_v21 = vmax.f32 %v658_v17, 0.0  ;;  %v661_v22 = vadd.f32 %v918_v20, %v803_v37  ;;  %v652_v23 = vpop.f32.mrb[31].mxu1 }
 0x1f5   : > { %v676_v24 = vmax.f32 %v650_v19, 0.0  ;;  %v653_v25 = vadd.f32 %v803_v37, %v652_v23 }
 0x1f6   : > { %v679_v26 = vmax.f32 %v661_v22, 0.0 }
 0x1f7   : > { %v677_v27 = vmax.f32 %v653_v25, 0.0 }
 0x1f8   : > { %v688_v28 = vpack.c.bf16 %v679_v26, %v678_v21 }
 0x1f9   : > { %v687_v29 = vpack.c.bf16 %v677_v27, %v676_v24 }
 0x1fb   : > { %926 = vmatpush3.bf16.xpose.msra.mxu0 %v684_v0 }
 0x1fc   : > { %927 = vmatprep.subr.bf16.mxu0 %v975_v34 }
 0x203   : > { %928 = vmatpush3.bf16.xpose.msra.mxu0 %v685_v15 }
 0x204   : > { %929 = vmatprep.subr.bf16.mxu0 %v975_v34 }
 0x20b   : > { %930 = vmatpush3.bf16.xpose.msra.mxu0 %v686_v14 }
 0x20c   : > { %931 = vmatprep.subr.bf16.mxu0 %v975_v34 }
 0x213   : > { %932 = vmatpush3.bf16.xpose.msra.mxu0 %v687_v29 }
 0x214   : > { %933 = vmatprep.subr.bf16.mxu0 %v975_v34 }
 0x21b   : > { %934 = vmatpush3.bf16.xpose.msra.mxu0 %v688_v28 }
 0x222   : > { %936 = vmatmul.mubr.bf16.vlgmr.msra.gmra.mrb[0].mxu0 %v680_v30 }
 0x2f5   : > { %v733_v37 = vpop.f32.mrb[0].mxu0 }
 0x2f6   : > { %v734_v38 = vadd.f32 %v733_v37, %v698_v36  ;;  %v937_v34 = vpop.f32.mrb[1].mxu0 }
 0x2f7   : > { %v736_v39 = vpop.f32.mrb[2].mxu0 }
 0x2f8   : > { %739 = vst [vmem:[%s278_s29] sm:$0x1] %v734_v38  ;;  %v938_v40 = vpop.f32.mrb[3].mxu0 }
 0x2f9 PF: > { %s19_s26 = sadd.s32 1, %s973_s26  }
 0x2fa   : > { %p16_p5 = scmp.ge.s32.totalorder %s19_s26, 4  }
 0x2fc   :  { %18 = sbr.rel (!%p16_p5) target bundleno = 3 (0x3), region = 78 }

</bundles_post_ra>
